<compile_context>
chip_gen: v6e
topology: v6e:2x2x1
jax: 0.10.0
libtpu: 0.0.40
codegen_flags: <defaults>
</compile_context>

<pallas_src>
import jax
import jax.numpy as jnp
from jax import lax
from jax.experimental import pallas as pl
from jax.experimental.pallas import tpu as pltpu

HIDDEN_SIZES = [128, 96, 64, 32, 16]
INPUT_SIZE = 8
PAD = 128          # all hidden widths padded to one full lane-width
MAX_TILE = 4096    # batch rows per grid step (primary tuning knob; sweep it)
VMEM_LIMIT_BYTES = 32 * 1024 * 1024   # v5e default is 16 MiB -> raise it


def _round_up(n, m):
    return -(-n // m) * m


def _mlp_kernel(x_ref,
                w1, b1, w2, b2, w3, b3, w4, b4, w5, b5, w6, b6,
                o_ref):
    # Hidden layers: bf16 operands into the MXU, f32 accumulation,
    # f32 bias/ReLU on the VPU (v5e-safe).
    h = x_ref[...].astype(jnp.bfloat16)
    h = jnp.maximum(
        jnp.dot(h, w1[...], preferred_element_type=jnp.float32) + b1[...], 0.0)
    h = jnp.maximum(
        jnp.dot(h.astype(jnp.bfloat16), w2[...],
                preferred_element_type=jnp.float32) + b2[...], 0.0)
    h = jnp.maximum(
        jnp.dot(h.astype(jnp.bfloat16), w3[...],
                preferred_element_type=jnp.float32) + b3[...], 0.0)
    h = jnp.maximum(
        jnp.dot(h.astype(jnp.bfloat16), w4[...],
                preferred_element_type=jnp.float32) + b4[...], 0.0)
    h = jnp.maximum(
        jnp.dot(h.astype(jnp.bfloat16), w5[...],
                preferred_element_type=jnp.float32) + b5[...], 0.0)
    # Final (padded 128 -> 1) layer: contract the LAST dims of the (1,128)
    # bf16 weight row and (TB,128) bf16 h (a trans_b contraction) so the MXU
    # produces (1, TB) directly -- batch on lanes, no materialized transpose,
    # fully lane-dense sigmoid + store.  Padded feature lanes are exactly zero.
    logits = lax.dot_general(
        w6[...], h.astype(jnp.bfloat16),
        dimension_numbers=(((1,), (1,)), ((), ())),
        preferred_element_type=jnp.float32) + b6[0, 0]   # b6 is a scalar in SMEM
    o_ref[...] = jax.nn.sigmoid(logits)


def init_params(key, input_size=INPUT_SIZE):
    """torch.nn.Linear-style init (uniform +-1/sqrt(fan_in)).

    Returns (raw, packed):
      raw    : unpadded f32 (w, b) pairs, for the pure-f32 reference.
      packed : kernel-order flat list
               [w1,b1,...,w5,b5, w6_row, b6] with hidden weights zero-padded to
               128 wide and cast to bf16, biases padded f32 (1,128), the final
               layer as a bf16 (1,128) row, and b6 as a (1,1) f32 scalar.
    """
    sizes = [input_size] + HIDDEN_SIZES + [1]
    raw = []
    for fan_in, fan_out in zip(sizes[:-1], sizes[1:]):
        key, kw, kb = jax.random.split(key, 3)
        bound = float(1.0 / (fan_in ** 0.5))
        w = jax.random.uniform(kw, (fan_in, fan_out), jnp.float32, -bound, bound)
        b = jax.random.uniform(kb, (fan_out,), jnp.float32, -bound, bound)
        raw.append((w, b))

    packed = []
    in_pad = input_size  # layer 1 keeps the 8-wide input (x's full last dim)
    for w, b in raw[:-1]:
        fan_in, fan_out = w.shape
        wp = jnp.zeros((in_pad, PAD), jnp.float32).at[:fan_in, :fan_out].set(w)
        bp = jnp.zeros((1, PAD), jnp.float32).at[0, :fan_out].set(b)
        packed += [wp.astype(jnp.bfloat16), bp]
        in_pad = PAD
    w_last, b_last = raw[-1]
    w6_row = jnp.zeros((1, PAD), jnp.float32).at[0, :w_last.shape[0]].set(w_last[:, 0])
    packed += [w6_row.astype(jnp.bfloat16), b_last.reshape(1, 1)]
    return raw, packed


def _choose_tiling(batch, max_tile):
    """Pick (batch_pad, tile, num_tiles) with lane-aligned tiles and an even
    grid (>= 2 steps) whenever the batch allows it, so both v7x TensorCores
    get balanced work."""
    batch_pad = max(PAD, _round_up(batch, PAD))
    num_tiles = max(1, -(-batch_pad // max_tile))
    if batch_pad >= 2 * PAD:
        num_tiles = max(2, num_tiles)
        if num_tiles % 2:
            num_tiles += 1
    tile = _round_up(-(-batch_pad // num_tiles), PAD)
    batch_pad = num_tiles * tile
    return batch_pad, tile, num_tiles


def race_predictor_forward(x, packed_params, max_tile=MAX_TILE):
    """x: (batch, 8) float32 -> (batch,) float32 (matches .squeeze())."""
    batch, feat = x.shape
    batch_pad, tile, num_tiles = _choose_tiling(batch, max_tile)
    if batch_pad != batch:
        x = jnp.pad(x, ((0, batch_pad - batch), (0, 0)))

    # Whole-array, grid-invariant specs for the weight/bias tensors: they are
    # DMA'd into VMEM once and stay resident across grid steps.  b6 (scalar)
    # lives in SMEM so it doesn't burn a padded (8,128) VMEM tile.
    vmem_weight_specs = [pl.BlockSpec(p.shape, lambda i: (0, 0))
                         for p in packed_params[:-1]]
    b6_spec = pl.BlockSpec(memory_space=pltpu.MemorySpace.SMEM)

    # Advisory cost hint: the real network is tiny, so tell XLA roughly what
    # this custom call does (flops for the padded-to-128 matmuls, the x/out
    # HBM traffic plus the one-shot weight DMA, and one sigmoid per row).
    flops_per_row = 2 * (INPUT_SIZE * PAD + 4 * PAD * PAD + PAD)
    weight_bytes = sum(int(p.size) * p.dtype.itemsize for p in packed_params)
    cost = pl.CostEstimate(
        flops=int(batch_pad * flops_per_row),
        transcendentals=int(batch_pad),
        bytes_accessed=int(batch_pad * (feat * 4 + 4) + weight_bytes),
    )

    out = pl.pallas_call(
        _mlp_kernel,
        out_shape=jax.ShapeDtypeStruct((1, batch_pad), jnp.float32),
        grid_spec=pltpu.PrefetchScalarGridSpec(
            num_scalar_prefetch=0,
            grid=(num_tiles,),
            in_specs=[pl.BlockSpec((tile, feat), lambda i: (i, 0))]
                     + vmem_weight_specs + [b6_spec],
            out_specs=pl.BlockSpec((1, tile), lambda i: (0, i)),
        ),
        compiler_params=pltpu.CompilerParams(
            dimension_semantics=("parallel",),
            vmem_limit_bytes=VMEM_LIMIT_BYTES),
        cost_estimate=cost,
    )(x, *packed_params)
    # PyTorch: self.network(x).squeeze()
    return out.reshape(-1)[:batch]


def _reference_forward_packed(x, packed):
    """Mirrors the kernel math exactly (padded params, bf16 dots, f32 acc)."""
    w1, b1, w2, b2, w3, b3, w4, b4, w5, b5, w6, b6 = packed
    h = x
    for w, b in ((w1, b1), (w2, b2), (w3, b3), (w4, b4), (w5, b5)):
        h = jnp.maximum(
            jnp.dot(h.astype(jnp.bfloat16), w,
                    preferred_element_type=jnp.float32) + b, 0.0)
    logits = lax.dot_general(
        w6, h.astype(jnp.bfloat16),
        dimension_numbers=(((1,), (1,)), ((), ())),
        preferred_element_type=jnp.float32) + b6[0, 0]
    return jax.nn.sigmoid(logits).reshape(-1)


def _reference_forward_f32(x, raw):
    """Pure f32, unpadded reference (sanity check on padding/wiring)."""
    h = x
    for i, (w, b) in enumerate(raw):
        h = h @ w + b
        if i < len(raw) - 1:
            h = jnp.maximum(h, 0.0)
    return jnp.squeeze(jax.nn.sigmoid(h), axis=-1)


def _check(batch, key_x, raw, packed):
    x = jax.random.normal(key_x, (batch, INPUT_SIZE), dtype=jnp.float32)
    y = jax.block_until_ready(race_predictor_forward(x, packed))
    assert y.shape == (batch,)
    y_mirror = _reference_forward_packed(x, packed)   # same bf16 math
    assert jnp.allclose(y, y_mirror, atol=1e-4, rtol=1e-4), \
        float(jnp.max(jnp.abs(y - y_mirror)))
    y_f32 = _reference_forward_f32(x, raw)            # loose f32 sanity check
    assert jnp.allclose(y, y_f32, atol=3e-2, rtol=3e-2), \
        float(jnp.max(jnp.abs(y - y_f32)))


if __name__ == "__main__":
    key = jax.random.PRNGKey(0)
    key_params, key_x1, key_x2 = jax.random.split(key, 3)
    raw_params, packed_params = init_params(key_params)

    # Small batch (single 128-row tile).
    _check(8, key_x1, raw_params, packed_params)
    # Larger batch exercising the multi-tile (even, megacore-friendly) grid
    # path + batch padding/slicing.
    _check(2500, key_x2, raw_params, packed_params)

    print("KERNEL_OK")
</pallas_src>

<mosaic_0001>
module attributes {stable_mosaic.version = 11 : i64} {
  func.func @_mlp_kernel(%arg0: i32, %arg1: memref<128x8xf32, #tpu.memory_space<vmem>>, %arg2: memref<8x128xbf16, #tpu.memory_space<vmem>>, %arg3: memref<1x128xf32, #tpu.memory_space<vmem>>, %arg4: memref<128x128xbf16, #tpu.memory_space<vmem>>, %arg5: memref<1x128xf32, #tpu.memory_space<vmem>>, %arg6: memref<128x128xbf16, #tpu.memory_space<vmem>>, %arg7: memref<1x128xf32, #tpu.memory_space<vmem>>, %arg8: memref<128x128xbf16, #tpu.memory_space<vmem>>, %arg9: memref<1x128xf32, #tpu.memory_space<vmem>>, %arg10: memref<128x128xbf16, #tpu.memory_space<vmem>>, %arg11: memref<1x128xf32, #tpu.memory_space<vmem>>, %arg12: memref<1x128xbf16, #tpu.memory_space<vmem>>, %arg13: memref<1x1xf32, #tpu.memory_space<smem>>, %arg14: memref<1x128xf32, #tpu.memory_space<vmem>>) attributes {dimension_semantics = [#tpu.dimension_semantics<parallel>], iteration_bounds = array<i64: 1>, scalar_prefetch = 0 : i64, scratch_operands = 0 : i64, tpu.core_type = #tpu.core_type<tc>, window_params = [{transform_indices = @transform_0, window_bounds = array<i64: 128, 8>}, {pipeline_mode = #tpu.pipeline_mode<synchronous>, transform_indices = @transform_1, window_bounds = array<i64: 8, 128>}, {pipeline_mode = #tpu.pipeline_mode<synchronous>, transform_indices = @transform_2, window_bounds = array<i64: 1, 128>}, {pipeline_mode = #tpu.pipeline_mode<synchronous>, transform_indices = @transform_3, window_bounds = array<i64: 128, 128>}, {pipeline_mode = #tpu.pipeline_mode<synchronous>, transform_indices = @transform_4, window_bounds = array<i64: 1, 128>}, {pipeline_mode = #tpu.pipeline_mode<synchronous>, transform_indices = @transform_5, window_bounds = array<i64: 128, 128>}, {pipeline_mode = #tpu.pipeline_mode<synchronous>, transform_indices = @transform_6, window_bounds = array<i64: 1, 128>}, {pipeline_mode = #tpu.pipeline_mode<synchronous>, transform_indices = @transform_7, window_bounds = array<i64: 128, 128>}, {pipeline_mode = #tpu.pipeline_mode<synchronous>, transform_indices = @transform_8, window_bounds = array<i64: 1, 128>}, {pipeline_mode = #tpu.pipeline_mode<synchronous>, transform_indices = @transform_9, window_bounds = array<i64: 128, 128>}, {pipeline_mode = #tpu.pipeline_mode<synchronous>, transform_indices = @transform_10, window_bounds = array<i64: 1, 128>}, {pipeline_mode = #tpu.pipeline_mode<synchronous>, transform_indices = @transform_11, window_bounds = array<i64: 1, 128>}, {transform_indices = @transform_12, window_bounds = array<i64: 1, 1>}, {transform_indices = @transform_13, window_bounds = array<i64: 1, 128>}]} {
    %c0 = arith.constant 0 : index
    %c0_0 = arith.constant 0 : index
    %0 = vector.load %arg1[%c0, %c0_0] : memref<128x8xf32, #tpu.memory_space<vmem>>, vector<128x8xf32>
    %1 = arith.truncf %0 : vector<128x8xf32> to vector<128x8xbf16>
    %c0_1 = arith.constant 0 : index
    %c0_2 = arith.constant 0 : index
    %2 = vector.load %arg2[%c0_1, %c0_2] : memref<8x128xbf16, #tpu.memory_space<vmem>>, vector<8x128xbf16>
    %cst = arith.constant dense<0.000000e+00> : vector<128x128xf32>
    %3 = tpu.matmul %1, %2, %cst {dimension_numbers = #tpu.dot_dimension_numbers<[1], [0], [0], [1], [0, 0, 1, 1], [], []>} : vector<128x8xbf16>, vector<8x128xbf16>, vector<128x128xf32> -> vector<128x128xf32>
    %c0_3 = arith.constant 0 : index
    %c0_4 = arith.constant 0 : index
    %4 = vector.load %arg3[%c0_3, %c0_4] : memref<1x128xf32, #tpu.memory_space<vmem>>, vector<1x128xf32>
    %5 = vector.broadcast %4 : vector<1x128xf32> to vector<128x128xf32>
    %6 = arith.addf %3, %5 : vector<128x128xf32>
    %cst_5 = arith.constant 0.000000e+00 : f32
    %7 = vector.broadcast %cst_5 : f32 to vector<128x128xf32>
    %8 = arith.maximumf %6, %7 : vector<128x128xf32>
    %9 = arith.truncf %8 : vector<128x128xf32> to vector<128x128xbf16>
    %c0_6 = arith.constant 0 : index
    %c0_7 = arith.constant 0 : index
    %10 = vector.load %arg4[%c0_6, %c0_7] : memref<128x128xbf16, #tpu.memory_space<vmem>>, vector<128x128xbf16>
    %cst_8 = arith.constant dense<0.000000e+00> : vector<128x128xf32>
    %11 = tpu.matmul %9, %10, %cst_8 {dimension_numbers = #tpu.dot_dimension_numbers<[1], [0], [0], [1], [0, 0, 1, 1], [], []>} : vector<128x128xbf16>, vector<128x128xbf16>, vector<128x128xf32> -> vector<128x128xf32>
    %c0_9 = arith.constant 0 : index
    %c0_10 = arith.constant 0 : index
    %12 = vector.load %arg5[%c0_9, %c0_10] : memref<1x128xf32, #tpu.memory_space<vmem>>, vector<1x128xf32>
    %13 = vector.broadcast %12 : vector<1x128xf32> to vector<128x128xf32>
    %14 = arith.addf %11, %13 : vector<128x128xf32>
    %cst_11 = arith.constant 0.000000e+00 : f32
    %15 = vector.broadcast %cst_11 : f32 to vector<128x128xf32>
    %16 = arith.maximumf %14, %15 : vector<128x128xf32>
    %17 = arith.truncf %16 : vector<128x128xf32> to vector<128x128xbf16>
    %c0_12 = arith.constant 0 : index
    %c0_13 = arith.constant 0 : index
    %18 = vector.load %arg6[%c0_12, %c0_13] : memref<128x128xbf16, #tpu.memory_space<vmem>>, vector<128x128xbf16>
    %cst_14 = arith.constant dense<0.000000e+00> : vector<128x128xf32>
    %19 = tpu.matmul %17, %18, %cst_14 {dimension_numbers = #tpu.dot_dimension_numbers<[1], [0], [0], [1], [0, 0, 1, 1], [], []>} : vector<128x128xbf16>, vector<128x128xbf16>, vector<128x128xf32> -> vector<128x128xf32>
    %c0_15 = arith.constant 0 : index
    %c0_16 = arith.constant 0 : index
    %20 = vector.load %arg7[%c0_15, %c0_16] : memref<1x128xf32, #tpu.memory_space<vmem>>, vector<1x128xf32>
    %21 = vector.broadcast %20 : vector<1x128xf32> to vector<128x128xf32>
    %22 = arith.addf %19, %21 : vector<128x128xf32>
    %cst_17 = arith.constant 0.000000e+00 : f32
    %23 = vector.broadcast %cst_17 : f32 to vector<128x128xf32>
    %24 = arith.maximumf %22, %23 : vector<128x128xf32>
    %25 = arith.truncf %24 : vector<128x128xf32> to vector<128x128xbf16>
    %c0_18 = arith.constant 0 : index
    %c0_19 = arith.constant 0 : index
    %26 = vector.load %arg8[%c0_18, %c0_19] : memref<128x128xbf16, #tpu.memory_space<vmem>>, vector<128x128xbf16>
    %cst_20 = arith.constant dense<0.000000e+00> : vector<128x128xf32>
    %27 = tpu.matmul %25, %26, %cst_20 {dimension_numbers = #tpu.dot_dimension_numbers<[1], [0], [0], [1], [0, 0, 1, 1], [], []>} : vector<128x128xbf16>, vector<128x128xbf16>, vector<128x128xf32> -> vector<128x128xf32>
    %c0_21 = arith.constant 0 : index
    %c0_22 = arith.constant 0 : index
    %28 = vector.load %arg9[%c0_21, %c0_22] : memref<1x128xf32, #tpu.memory_space<vmem>>, vector<1x128xf32>
    %29 = vector.broadcast %28 : vector<1x128xf32> to vector<128x128xf32>
    %30 = arith.addf %27, %29 : vector<128x128xf32>
    %cst_23 = arith.constant 0.000000e+00 : f32
    %31 = vector.broadcast %cst_23 : f32 to vector<128x128xf32>
    %32 = arith.maximumf %30, %31 : vector<128x128xf32>
    %33 = arith.truncf %32 : vector<128x128xf32> to vector<128x128xbf16>
    %c0_24 = arith.constant 0 : index
    %c0_25 = arith.constant 0 : index
    %34 = vector.load %arg10[%c0_24, %c0_25] : memref<128x128xbf16, #tpu.memory_space<vmem>>, vector<128x128xbf16>
    %cst_26 = arith.constant dense<0.000000e+00> : vector<128x128xf32>
    %35 = tpu.matmul %33, %34, %cst_26 {dimension_numbers = #tpu.dot_dimension_numbers<[1], [0], [0], [1], [0, 0, 1, 1], [], []>} : vector<128x128xbf16>, vector<128x128xbf16>, vector<128x128xf32> -> vector<128x128xf32>
    %c0_27 = arith.constant 0 : index
    %c0_28 = arith.constant 0 : index
    %36 = vector.load %arg11[%c0_27, %c0_28] : memref<1x128xf32, #tpu.memory_space<vmem>>, vector<1x128xf32>
    %37 = vector.broadcast %36 : vector<1x128xf32> to vector<128x128xf32>
    %38 = arith.addf %35, %37 : vector<128x128xf32>
    %cst_29 = arith.constant 0.000000e+00 : f32
    %39 = vector.broadcast %cst_29 : f32 to vector<128x128xf32>
    %40 = arith.maximumf %38, %39 : vector<128x128xf32>
    %c0_30 = arith.constant 0 : index
    %c0_31 = arith.constant 0 : index
    %41 = vector.load %arg12[%c0_30, %c0_31] : memref<1x128xbf16, #tpu.memory_space<vmem>>, vector<1x128xbf16>
    %42 = arith.truncf %40 : vector<128x128xf32> to vector<128x128xbf16>
    %cst_32 = arith.constant dense<0.000000e+00> : vector<1x128xf32>
    %43 = tpu.matmul %41, %42, %cst_32 {dimension_numbers = #tpu.dot_dimension_numbers<[1], [1], [0], [0], [0, 0, 1, 0], [], []>} : vector<1x128xbf16>, vector<128x128xbf16>, vector<1x128xf32> -> vector<1x128xf32>
    %c0_33 = arith.constant 0 : index
    %c0_34 = arith.constant 0 : index
    %44 = memref.load %arg13[%c0_33, %c0_34] : memref<1x1xf32, #tpu.memory_space<smem>>
    %45 = vector.broadcast %44 : f32 to vector<1x128xf32>
    %46 = arith.addf %43, %45 : vector<1x128xf32>
    %47 = arith.negf %46 : vector<1x128xf32>
    %48 = math.exp %47 : vector<1x128xf32>
    %cst_35 = arith.constant 1.000000e+00 : f32
    %49 = vector.broadcast %cst_35 : f32 to vector<1x128xf32>
    %50 = arith.addf %49, %48 : vector<1x128xf32>
    %51 = arith.divf %49, %50 : vector<1x128xf32>
    %c0_36 = arith.constant 0 : index
    %c0_37 = arith.constant 0 : index
    %52 = vector.load %arg14[%c0_36, %c0_37] : memref<1x128xf32, #tpu.memory_space<vmem>>, vector<1x128xf32>
    tpu.vector_store %arg14[%c0_36, %c0_37], %51 {strides = array<i32>} : memref<1x128xf32, #tpu.memory_space<vmem>>, vector<1x128xf32>,
    return
  }
  func.func @transform_0(%arg0: i32) -> (i32, i32) {
    %c0_i32 = arith.constant 0 : i32
    %c0_i32_0 = arith.constant 0 : i32
    return %arg0, %c0_i32 : i32, i32
  }
  func.func @transform_1(%arg0: i32) -> (i32, i32) {
    %c0_i32 = arith.constant 0 : i32
    %c0_i32_0 = arith.constant 0 : i32
    %c0_i32_1 = arith.constant 0 : i32
    return %c0_i32, %c0_i32_0 : i32, i32
  }
  func.func @transform_2(%arg0: i32) -> (i32, i32) {
    %c0_i32 = arith.constant 0 : i32
    %c0_i32_0 = arith.constant 0 : i32
    %c0_i32_1 = arith.constant 0 : i32
    return %c0_i32, %c0_i32_0 : i32, i32
  }
  func.func @transform_3(%arg0: i32) -> (i32, i32) {
    %c0_i32 = arith.constant 0 : i32
    %c0_i32_0 = arith.constant 0 : i32
    %c0_i32_1 = arith.constant 0 : i32
    return %c0_i32, %c0_i32_0 : i32, i32
  }
  func.func @transform_4(%arg0: i32) -> (i32, i32) {
    %c0_i32 = arith.constant 0 : i32
    %c0_i32_0 = arith.constant 0 : i32
    %c0_i32_1 = arith.constant 0 : i32
    return %c0_i32, %c0_i32_0 : i32, i32
  }
  func.func @transform_5(%arg0: i32) -> (i32, i32) {
    %c0_i32 = arith.constant 0 : i32
    %c0_i32_0 = arith.constant 0 : i32
    %c0_i32_1 = arith.constant 0 : i32
    return %c0_i32, %c0_i32_0 : i32, i32
  }
  func.func @transform_6(%arg0: i32) -> (i32, i32) {
    %c0_i32 = arith.constant 0 : i32
    %c0_i32_0 = arith.constant 0 : i32
    %c0_i32_1 = arith.constant 0 : i32
    return %c0_i32, %c0_i32_0 : i32, i32
  }
  func.func @transform_7(%arg0: i32) -> (i32, i32) {
    %c0_i32 = arith.constant 0 : i32
    %c0_i32_0 = arith.constant 0 : i32
    %c0_i32_1 = arith.constant 0 : i32
    return %c0_i32, %c0_i32_0 : i32, i32
  }
  func.func @transform_8(%arg0: i32) -> (i32, i32) {
    %c0_i32 = arith.constant 0 : i32
    %c0_i32_0 = arith.constant 0 : i32
    %c0_i32_1 = arith.constant 0 : i32
    return %c0_i32, %c0_i32_0 : i32, i32
  }
  func.func @transform_9(%arg0: i32) -> (i32, i32) {
    %c0_i32 = arith.constant 0 : i32
    %c0_i32_0 = arith.constant 0 : i32
    %c0_i32_1 = arith.constant 0 : i32
    return %c0_i32, %c0_i32_0 : i32, i32
  }
  func.func @transform_10(%arg0: i32) -> (i32, i32) {
    %c0_i32 = arith.constant 0 : i32
    %c0_i32_0 = arith.constant 0 : i32
    %c0_i32_1 = arith.constant 0 : i32
    return %c0_i32, %c0_i32_0 : i32, i32
  }
  func.func @transform_11(%arg0: i32) -> (i32, i32) {
    %c0_i32 = arith.constant 0 : i32
    %c0_i32_0 = arith.constant 0 : i32
    %c0_i32_1 = arith.constant 0 : i32
    return %c0_i32, %c0_i32_0 : i32, i32
  }
  func.func @transform_12(%arg0: i32) -> (i32, i32) {
    %c0_i32 = arith.constant 0 : i32
    %c0_i32_0 = arith.constant 0 : i32
    %c0_i32_1 = arith.constant 0 : i32
    return %c0_i32, %c0_i32_0 : i32, i32
  }
  func.func @transform_13(%arg0: i32) -> (i32, i32) {
    %c0_i32 = arith.constant 0 : i32
    %c0_i32_0 = arith.constant 0 : i32
    return %c0_i32, %arg0 : i32, i32
  }
}

</mosaic_0001>

<bundles_post_ra>
// kernel: tpu_custom_call.1
= control target key start
LH: loop header
LB: loop body
LE: loop exit
PB: predicated region body
PF: predicated region fallthrough
CT: control target
= control target key end

     0   :  { %19 = vsyncpa [#allocation4], 0  ;;  %s1736_s0 = inlined_call_operand.vmem [shape: f32[128,8], index: 0, kind: input, shape index: {}]   ;;  %s1737_s1 = inlined_call_operand.vmem [shape: bf16[8,128], index: 1, kind: input, shape index: {}]   ;;  %s1738_s2 = inlined_call_operand.vmem [shape: f32[1,128], index: 2, kind: input, shape index: {}]   ;;  %s1739_s3 = inlined_call_operand.vmem [shape: bf16[128,128], index: 3, kind: input, shape index: {}]   ;;  %s1740_s4 = inlined_call_operand.vmem [shape: f32[1,128], index: 4, kind: input, shape index: {}]   ;;  %s1741_s5 = inlined_call_operand.vmem [shape: bf16[128,128], index: 5, kind: input, shape index: {}]   ;;  %s1742_s6 = inlined_call_operand.vmem [shape: f32[1,128], index: 6, kind: input, shape index: {}]   ;;  %s1743_s7 = inlined_call_operand.hbm [shape: bf16[128,128], index: 7, kind: input, shape index: {}]   ;;  %s1744_s8 = inlined_call_operand.vmem [shape: f32[1,128], index: 8, kind: input, shape index: {}]   ;;  %s1745_s9 = inlined_call_operand.hbm [shape: bf16[128,128], index: 9, kind: input, shape index: {}]   ;;  %s1746_s10 = inlined_call_operand.vmem [shape: f32[1,128], index: 10, kind: input, shape index: {}]   ;;  %s1747_s11 = inlined_call_operand.vmem [shape: bf16[1,128], index: 11, kind: input, shape index: {}]   ;;  %s1748_s12 = inlined_call_operand.<no memory space> [shape: f32[1,1], index: 12, kind: input, shape index: {}]   ;;  %s1749_s13 = inlined_call_operand.hbm [shape: f32[1,128], index: 13, kind: output, shape index: {}]  }
   0x1   :  { %20 = vsyncpa [#allocation7], 0 }
   0x2   :  { %21 = vsyncpa [#allocation5], 0  ;;  %s1495_s25 = smov [#allocation3]  }
   0x3   :  { %s41_s26 = sshll.u32 %s1495_s25, 4  ;;  %s42_s26 = int_to_ptr.vmem [resolvable:$true] %s41_s26 }
   0x4   :  { %s1437_s27 = scalar_lea.vmem %s42_s26, 1024  ;;  %p1442_p1 = scmp.lt.s32.totalorder %s42_s26, %s42_s26 }
   0x5   :  { %p1438_p0 = scmp.ne.s32.totalorder %s42_s26, %s1437_s27  ;;  %p1443_p2 = scmp.lt.s32.totalorder %s1437_s27, %s1437_s27 }
   0x7   :  { %p1444_p3 = por %p1443_p2, %p1442_p1 }
   0x9   :  { %p1445_p4 = pnand %p1444_p3, %p1438_p0 }
   0xb   :  { %1448 = shalt.err (!%p1445_p4)
}
   0xc   :  { %s1496_s28 = smov 64   ;;  %s1497_s29 = smov 4  }
   0xd   :  { %47 = dma.hbm_to_vmem [thread:$0]  %s1743_s7, 1024, %s42_s26, [#allocation4], %s1496_s28, %s1496_s28, %s1497_s29  }
   0xe   :  { %s1498_s15 = smov [#allocation6]  }
   0xf   :  { %s55_s16 = sshll.u32 %s1498_s15, 4  ;;  %s56_s16 = int_to_ptr.vmem [resolvable:$true] %s55_s16 }
  0x10   :  { %s1457_s17 = scalar_lea.vmem %s56_s16, 1024  ;;  %p1462_p6 = scmp.lt.s32.totalorder %s56_s16, %s56_s16 }
  0x11   :  { %p1458_p5 = scmp.ne.s32.totalorder %s56_s16, %s1457_s17  ;;  %p1463_p7 = scmp.lt.s32.totalorder %s1457_s17, %s1457_s17 }
  0x13   :  { %p1464_p8 = por %p1463_p7, %p1462_p6 }
  0x15   :  { %p1465_p9 = pnand %p1464_p8, %p1458_p5 }
  0x17   :  { %1468 = shalt.err (!%p1465_p9)
}
  0x18   :  { %61 = dma.hbm_to_vmem [thread:$0]  %s1745_s9, 1024, %s56_s16, [#allocation7], %s1496_s28, %s1496_s28, %s1497_s29  }
  0x19   :  { %1489 = dma.done.wait [#allocation4], 1024  }
  0x1a   :  { %1490 = vsyncadd [#allocation4], 4294966272 }
  0x1b   :  { %1491 = dma.done.wait [#allocation7], 1024  }
  0x1c   :  { %1492 = vsyncadd [#allocation7], 4294966272  ;;  %vm132_vm0 = vcmask 1043456   ;;  %v99_v0 = vld [vmem:[%s1737_s1] sm:$0xf]  ;;  %v76_v2 = vld [vmem:[%s1736_s0 + $0x8] sm:$0xff] }
  0x1d   :  { %v75_v1 = vld [vmem:[%s1736_s0] sm:$0xff]  ;;  %vm107_vm1 = vcmask 64512   ;;  %1385 = vmatprep.subr.msk.bf16.mxu1 %vm132_vm0, %v99_v0  ;;  %v134_v3 = vsel %vm132_vm0, %v99_v0, 0  ;;  %v77_v5 = vld [vmem:[%s1736_s0 + $0x10] sm:$0xff]  ;;  %v78_v6 = vld [vmem:[%s1736_s0 + $0x18] sm:$0xff]  ;;  %vm1500_vm2 = vmmov 0  }
  0x1e   :  { %v91_v4 = vpack.c.bf16 %v76_v2, %v75_v1  ;;  %v79_v7 = vld [vmem:[%s1736_s0 + $0x20] sm:$0xff]  ;;  %1220 = vmatpush3.bf16.msra.mxu1 %v134_v3  ;;  %v92_v8 = vpack.c.bf16 %v78_v6, %v77_v5  ;;  %v80_v9 = vld [vmem:[%s1736_s0 + $0x28] sm:$0xff]  ;;  %v81_v11 = vld [vmem:[%s1736_s0 + $0x30] sm:$0xff]  ;;  %s1501_s28 = smov [#allocation8]  }
  0x1f   :  { %v93_v10 = vpack.c.bf16 %v80_v9, %v79_v7  ;;  %v82_v12 = vld [vmem:[%s1736_s0 + $0x38] sm:$0xff]  ;;  %v83_v13 = vld [vmem:[%s1736_s0 + $0x40] sm:$0xff]  ;;  %v84_v14 = vld [vmem:[%s1736_s0 + $0x48] sm:$0xff]  ;;  %s1081_s29 = sshll.u32 %s1501_s28, 4  ;;  %s1082_s29 = int_to_ptr.vmem [resolvable:$true] %s1081_s29 }
  0x20   :  { %1221 = vmatprep.mubr.msk.bf16.mxu1 %vm107_vm1, %v91_v4  ;;  %v1393_v15 = vld [vmem:[%s1739_s3 + $0x38] sm:$0xff]   ;;  %v1394_v16 = vld [vmem:[%s1739_s3 + $0x30] sm:$0xff]   ;;  %v94_v17 = vpack.c.bf16 %v82_v12, %v81_v11  ;;  %v95_v18 = vpack.c.bf16 %v84_v14, %v83_v13  ;;  %v1395_v19 = vld [vmem:[%s1739_s3 + $0x28] sm:$0xff]   ;;  %p1474_p11 = scmp.lt.s32.totalorder %s1082_s29, %s1082_s29 }
  0x21   :  { %1222 = vmatmul.mubr.msk.bf16.vlgmr.msra.gmra.mxu1 %vm107_vm1, %v92_v8  ;;  %1237 = vmatprep.subr.bf16.mxu0 %v1393_v15  ;;  %v85_v20 = vld [vmem:[%s1736_s0 + $0x50] sm:$0xff]  ;;  %v86_v21 = vld [vmem:[%s1736_s0 + $0x58] sm:$0xff]  ;;  %v1396_v22 = vld [vmem:[%s1739_s3 + $0x20] sm:$0xff]  }
  0x22   :  { %1225 = vmatprep.mubr.msk.bf16.mxu1 %vm107_vm1, %v93_v10  ;;  %1238 = vmatpush3.bf16.msra.mxu0 %v1393_v15  ;;  %v87_v23 = vld [vmem:[%s1736_s0 + $0x60] sm:$0xff]  ;;  %v88_v24 = vld [vmem:[%s1736_s0 + $0x68] sm:$0xff]  ;;  %v1397_v25 = vld [vmem:[%s1739_s3 + $0x18] sm:$0xff]   ;;  %v96_v26 = vpack.c.bf16 %v86_v21, %v85_v20 }
  0x23   :  { %1239 = vmatprep.subr.bf16.mxu0 %v1394_v16  ;;  %v97_v27 = vpack.c.bf16 %v88_v24, %v87_v23  ;;  %v89_v28 = vld [vmem:[%s1736_s0 + $0x70] sm:$0xff]  ;;  %v90_v29 = vld [vmem:[%s1736_s0 + $0x78] sm:$0xff]  ;;  %v1399_v32 = vld [vmem:[%s1739_s3 + $0x8] sm:$0xff]  }
  0x24   :  { %v98_v30 = vpack.c.bf16 %v90_v29, %v89_v28  ;;  %v1398_v31 = vld [vmem:[%s1739_s3 + $0x10] sm:$0xff]   ;;  %v1400_v33 = vld [vmem:[%s1739_s3] sm:$0xff]   ;;  %v1401_v34 = vld [vmem:[%s1741_s5 + $0x38] sm:$0xff]  }
  0x25   :  { %v1667_v37 = vld [vmem:[%s1738_s2] ss:$0 sm:$0xff]  ;;  %v1402_v53 = vld [vmem:[%s1741_s5 + $0x30] sm:$0xff]   ;;  %v1403_v61 = vld [vmem:[%s1741_s5 + $0x28] sm:$0xff]   ;;  %s1473_s2 = scalar_lea.vmem %s1082_s29, 32 }
  0x26   :  { %1240 = vmatpush3.bf16.msra.mxu0 %v1394_v16  ;;  %v1404_v5 = vld [vmem:[%s1741_s5 + $0x20] sm:$0xff]   ;;  %v1405_v13 = vld [vmem:[%s1741_s5 + $0x18] sm:$0xff]  }
  0x27   :  { %1241 = vmatprep.subr.bf16.mxu0 %v1395_v19 }
  0x29   :  { %1226 = vmatmul.mubr.msk.bf16.gmra.mxu1 %vm107_vm1, %v94_v17 }
  0x2a   :  { %1229 = vmatprep.mubr.msk.bf16.mxu1 %vm107_vm1, %v95_v18  ;;  %1242 = vmatpush3.bf16.msra.mxu0 %v1395_v19 }
  0x2b   :  { %1243 = vmatprep.subr.bf16.mxu0 %v1396_v22 }
  0x2e   :  { %1244 = vmatpush3.bf16.msra.mxu0 %v1396_v22 }
  0x2f   :  { %1245 = vmatprep.subr.bf16.mxu0 %v1397_v25 }
  0x31   :  { %1230 = vmatmul.mubr.msk.bf16.gmra.mxu1 %vm107_vm1, %v96_v26 }
  0x32   :  { %1233 = vmatprep.mubr.msk.bf16.mxu1 %vm107_vm1, %v97_v27  ;;  %1246 = vmatpush3.bf16.msra.mxu0 %v1397_v25 }
  0x33   :  { %1247 = vmatprep.subr.bf16.mxu0 %v1398_v31 }
  0x36   :  { %1248 = vmatpush3.bf16.msra.mxu0 %v1398_v31 }
  0x37   :  { %1249 = vmatprep.subr.bf16.mxu0 %v1399_v32 }
  0x39   :  { %1234 = vmatmul.mubr.msk.bf16.gmra.mxu1 %vm107_vm1, %v98_v30 }
  0x3a   :  { %1250 = vmatpush3.bf16.msra.mxu0 %v1399_v32  ;;  %v1406_v32 = vld [vmem:[%s1741_s5 + $0x10] sm:$0xff]  }
  0x3b   :  { %1251 = vmatprep.subr.bf16.mxu0 %v1400_v33 }
  0x3e   :  { %1252 = vmatpush3.bf16.msra.mxu0 %v1400_v33  ;;  %v1407_v33 = vld [vmem:[%s1741_s5 + $0x8] sm:$0xff]  }
  0x3f   :  { %1269 = vmatprep.subr.bf16.mxu0 %v1401_v34 }
  0xe1   :  { %v1223_v35 = vpop.f32.mrf.mxu1 }
  0xe2   :  { %v179_v41 = vadd.f32 %v1223_v35, %v1667_v37  ;;  %v1409_v35 = vld [vmem:[#allocation3 + $0x38] sm:$0xff]  }
  0xe3   :  { %v170_v36 = vpop.f32.mrf.mxu1  ;;  %1301 = vmatprep.subr.bf16.mxu1 %v1409_v35 }
  0xe4   :  { %v171_v39 = vadd.f32 %v1667_v37, %v170_v36  ;;  %v235_v48 = vmax.f32 %v179_v41, 0.0  ;;  %v1410_v36 = vld [vmem:[#allocation3 + $0x30] sm:$0xff]   ;;  %1302 = vmatpush3.bf16.msra.mxu1 %v1409_v35  ;;  %v1416_v35 = vld [vmem:[#allocation3] sm:$0xff]  }
  0xe5   :  { %v1224_v38 = vpop.f32.mrf.mxu1  ;;  %1303 = vmatprep.subr.bf16.mxu1 %v1410_v36 }
  0xe6   :  { %v182_v40 = vadd.f32 %v1224_v38, %v1667_v37  ;;  %v233_v46 = vmax.f32 %v171_v39, 0.0  ;;  %v1412_v38 = vld [vmem:[#allocation3 + $0x20] sm:$0xff]   ;;  %v1413_v39 = vld [vmem:[#allocation3 + $0x18] sm:$0xff]  }
  0xe7   :  { %v173_v42 = vpop.f32.mrf.mxu1 }
  0xe8   :  { %v174_v43 = vadd.f32 %v1667_v37, %v173_v42  ;;  %v236_v44 = vmax.f32 %v182_v40, 0.0  ;;  %1304 = vmatpush3.bf16.msra.mxu1 %v1410_v36  ;;  %v1100_v42 = vld [vmem:[%s1740_s4] ss:$0 sm:$0xff]  ;;  %v1417_v36 = vld [vmem:[#allocation6 + $0x38] sm:$0xff]  }
  0xe9   :  { %v1227_v45 = vpop.f32.mrf.mxu1 }
  0xea   :  { %v234_v47 = vmax.f32 %v174_v43, 0.0  ;;  %v250_v51 = vpack.c.bf16 %v236_v44, %v235_v48  ;;  %v195_v56 = vadd.f32 %v1227_v45, %v1667_v37 }
  0xeb   :  { %v186_v49 = vpop.f32.mrf.mxu1 }
  0xec   :  { %v249_v50 = vpack.c.bf16 %v234_v47, %v233_v46  ;;  %v187_v54 = vadd.f32 %v1667_v37, %v186_v49  ;;  %v239_v0 = vmax.f32 %v195_v56, 0.0 }
  0xed   :  { %v1228_v52 = vpop.f32.mrf.mxu1 }
  0xee   :  { %v198_v55 = vadd.f32 %v1228_v52, %v1667_v37  ;;  %1253 = vmatprep.mubr.bf16.mxu0 %v249_v50  ;;  %v237_v62 = vmax.f32 %v187_v54, 0.0 }
  0xef   :  { %v189_v57 = vpop.f32.mrf.mxu1  ;;  %1254 = vmatmul.mubr.bf16.vlgmr.msra.gmra.mxu0 %v250_v51 }
  0xf0   :  { %v190_v58 = vadd.f32 %v1667_v37, %v189_v57  ;;  %1270 = vmatpush3.bf16.msra.mxu0 %v1401_v34  ;;  %v240_v59 = vmax.f32 %v198_v55, 0.0  ;;  %v1408_v34 = vld [vmem:[%s1741_s5] sm:$0xff]  }
  0xf1   :  { %v1231_v60 = vpop.f32.mrf.mxu1  ;;  %1271 = vmatprep.subr.bf16.mxu0 %v1402_v53 }
  0xf2   :  { %v238_v63 = vmax.f32 %v190_v58, 0.0  ;;  %v252_v3 = vpack.c.bf16 %v240_v59, %v239_v0  ;;  %v211_v8 = vadd.f32 %v1231_v60, %v1667_v37 }
  0xf3   :  { %v202_v1 = vpop.f32.mrf.mxu1 }
  0xf4   :  { %v251_v2 = vpack.c.bf16 %v238_v63, %v237_v62  ;;  %1272 = vmatpush3.bf16.msra.mxu0 %v1402_v53  ;;  %v203_v6 = vadd.f32 %v1667_v37, %v202_v1  ;;  %v243_v16 = vmax.f32 %v211_v8, 0.0 }
  0xf5   :  { %v1232_v4 = vpop.f32.mrf.mxu1  ;;  %1273 = vmatprep.subr.bf16.mxu0 %v1403_v61 }
  0xf6   :  { %v214_v7 = vadd.f32 %v1232_v4, %v1667_v37  ;;  %1257 = vmatprep.mubr.bf16.mxu0 %v251_v2  ;;  %v241_v14 = vmax.f32 %v203_v6, 0.0 }
  0xf7   :  { %v205_v9 = vpop.f32.mrf.mxu1  ;;  %1258 = vmatmul.mubr.bf16.gmra.mxu0 %v252_v3 }
  0xf8   :  { %v206_v10 = vadd.f32 %v1667_v37, %v205_v9  ;;  %1274 = vmatpush3.bf16.msra.mxu0 %v1403_v61  ;;  %v244_v11 = vmax.f32 %v214_v7, 0.0 }
  0xf9   :  { %v1235_v12 = vpop.f32.mrf.mxu1  ;;  %1275 = vmatprep.subr.bf16.mxu0 %v1404_v5 }
  0xfa   :  { %v242_v15 = vmax.f32 %v206_v10, 0.0  ;;  %v254_v19 = vpack.c.bf16 %v244_v11, %v243_v16  ;;  %v227_v23 = vadd.f32 %v1235_v12, %v1667_v37 }
  0xfb   :  { %v218_v17 = vpop.f32.mrf.mxu1 }
  0xfc   :  { %v253_v18 = vpack.c.bf16 %v242_v15, %v241_v14  ;;  %1276 = vmatpush3.bf16.msra.mxu0 %v1404_v5  ;;  %v219_v21 = vadd.f32 %v1667_v37, %v218_v17  ;;  %v247_v29 = vmax.f32 %v227_v23, 0.0 }
  0xfd   :  { %v1236_v20 = vpop.f32.mrf.mxu1  ;;  %1277 = vmatprep.subr.bf16.mxu0 %v1405_v13 }
  0xfe   :  { %v230_v22 = vadd.f32 %v1236_v20, %v1667_v37  ;;  %1261 = vmatprep.mubr.bf16.mxu0 %v253_v18  ;;  %v245_v27 = vmax.f32 %v219_v21, 0.0 }
  0xff   :  { %v221_v24 = vpop.f32.mrf.mxu1  ;;  %1262 = vmatmul.mubr.bf16.gmra.mxu0 %v254_v19 }
 0x100   :  { %v222_v25 = vadd.f32 %v1667_v37, %v221_v24  ;;  %1278 = vmatpush3.bf16.msra.mxu0 %v1405_v13  ;;  %v248_v26 = vmax.f32 %v230_v22, 0.0  ;;  %v1411_v37 = vld [vmem:[#allocation3 + $0x28] sm:$0xff]  }
 0x101   :  { %1279 = vmatprep.subr.bf16.mxu0 %v1406_v32  ;;  %1305 = vmatprep.subr.bf16.mxu1 %v1411_v37 }
 0x102   :  { %v246_v28 = vmax.f32 %v222_v25, 0.0  ;;  %v256_v31 = vpack.c.bf16 %v248_v26, %v247_v29  ;;  %1306 = vmatpush3.bf16.msra.mxu1 %v1411_v37  ;;  %v1418_v37 = vld [vmem:[#allocation6 + $0x30] sm:$0xff]  }
 0x103   :  { %1307 = vmatprep.subr.bf16.mxu1 %v1412_v38 }
 0x104   :  { %v255_v30 = vpack.c.bf16 %v246_v28, %v245_v27  ;;  %1280 = vmatpush3.bf16.msra.mxu0 %v1406_v32 }
 0x105   :  { %1281 = vmatprep.subr.bf16.mxu0 %v1407_v33 }
 0x106   :  { %1265 = vmatprep.mubr.bf16.mxu0 %v255_v30  ;;  %1308 = vmatpush3.bf16.msra.mxu1 %v1412_v38  ;;  %v1419_v38 = vld [vmem:[#allocation6 + $0x28] sm:$0xff]  }
 0x107   :  { %1266 = vmatmul.mubr.bf16.gmra.mxu0 %v256_v31  ;;  %1309 = vmatprep.subr.bf16.mxu1 %v1413_v39 }
 0x108   :  { %1282 = vmatpush3.bf16.msra.mxu0 %v1407_v33  ;;  %v1414_v33 = vld [vmem:[#allocation3 + $0x10] sm:$0xff]  }
 0x109   :  { %1283 = vmatprep.subr.bf16.mxu0 %v1408_v34 }
 0x10a   :  { %1310 = vmatpush3.bf16.msra.mxu1 %v1413_v39  ;;  %v1420_v39 = vld [vmem:[#allocation6 + $0x20] sm:$0xff]  }
 0x10b   :  { %1311 = vmatprep.subr.bf16.mxu1 %v1414_v33 }
 0x10c   :  { %1284 = vmatpush3.bf16.msra.mxu0 %v1408_v34  ;;  %v1415_v34 = vld [vmem:[#allocation3 + $0x8] sm:$0xff]  }
 0x10d   :  { %1333 = vmatprep.subr.bf16.mxu0 %v1417_v36 }
 0x10e   :  { %1312 = vmatpush3.bf16.msra.mxu1 %v1414_v33 }
 0x10f   :  { %1313 = vmatprep.subr.bf16.mxu1 %v1415_v34 }
 0x112   :  { %1314 = vmatpush3.bf16.msra.mxu1 %v1415_v34  ;;  %v1422_v34 = vld [vmem:[#allocation6 + $0x10] sm:$0xff]  }
 0x113   :  { %1315 = vmatprep.subr.bf16.mxu1 %v1416_v35 }
 0x116   :  { %1316 = vmatpush3.bf16.msra.mxu1 %v1416_v35  ;;  %v1423_v35 = vld [vmem:[#allocation6 + $0x8] sm:$0xff]  }
 0x1af   :  { %v1255_v40 = vpop.f32.mrf.mxu0 }
 0x1b0   :  { %v371_v46 = vadd.f32 %v1255_v40, %v1100_v42  ;;  %v1421_v40 = vld [vmem:[#allocation6 + $0x18] sm:$0xff]  }
 0x1b1   :  { %v362_v41 = vpop.f32.mrf.mxu0 }
 0x1b2   :  { %v363_v44 = vadd.f32 %v1100_v42, %v362_v41  ;;  %v427_v53 = vmax.f32 %v371_v46, 0.0 }
 0x1b3   :  { %v1256_v43 = vpop.f32.mrf.mxu0 }
 0x1b4   :  { %v374_v45 = vadd.f32 %v1256_v43, %v1100_v42  ;;  %v425_v51 = vmax.f32 %v363_v44, 0.0  ;;  %v1109_v43 = vld [vmem:[%s1742_s6] ss:$0 sm:$0xff] }
 0x1b5   :  { %v365_v47 = vpop.f32.mrf.mxu0 }
 0x1b6   :  { %v366_v48 = vadd.f32 %v1100_v42, %v365_v47  ;;  %v428_v49 = vmax.f32 %v374_v45, 0.0 }
 0x1b7   :  { %v1259_v50 = vpop.f32.mrf.mxu0 }
 0x1b8   :  { %v426_v52 = vmax.f32 %v366_v48, 0.0  ;;  %v442_v56 = vpack.c.bf16 %v428_v49, %v427_v53  ;;  %v387_v60 = vadd.f32 %v1259_v50, %v1100_v42 }
 0x1b9   :  { %v378_v54 = vpop.f32.mrf.mxu0 }
 0x1ba   :  { %v441_v55 = vpack.c.bf16 %v426_v52, %v425_v51  ;;  %v379_v58 = vadd.f32 %v1100_v42, %v378_v54  ;;  %v431_v3 = vmax.f32 %v387_v60, 0.0 }
 0x1bb   :  { %v1260_v57 = vpop.f32.mrf.mxu0 }
 0x1bc   :  { %v390_v59 = vadd.f32 %v1260_v57, %v1100_v42  ;;  %1285 = vmatprep.mubr.bf16.mxu0 %v441_v55  ;;  %v429_v1 = vmax.f32 %v379_v58, 0.0 }
 0x1bd   :  { %v381_v61 = vpop.f32.mrf.mxu0  ;;  %1286 = vmatmul.mubr.bf16.vlgmr.msra.gmra.mxu0 %v442_v56 }
 0x1be   :  { %v382_v62 = vadd.f32 %v1100_v42, %v381_v61  ;;  %v432_v63 = vmax.f32 %v390_v59, 0.0  ;;  %1334 = vmatpush3.bf16.msra.mxu0 %v1417_v36  ;;  %v1424_v36 = vld [vmem:[#allocation6] sm:$0xff]  }
 0x1bf   :  { %v1263_v0 = vpop.f32.mrf.mxu0  ;;  %1335 = vmatprep.subr.bf16.mxu0 %v1418_v37 }
 0x1c0   :  { %v430_v2 = vmax.f32 %v382_v62, 0.0  ;;  %v444_v6 = vpack.c.bf16 %v432_v63, %v431_v3  ;;  %v403_v10 = vadd.f32 %v1263_v0, %v1100_v42 }
 0x1c1   :  { %v394_v4 = vpop.f32.mrf.mxu0 }
 0x1c2   :  { %v443_v5 = vpack.c.bf16 %v430_v2, %v429_v1  ;;  %v395_v8 = vadd.f32 %v1100_v42, %v394_v4  ;;  %v435_v17 = vmax.f32 %v403_v10, 0.0  ;;  %1336 = vmatpush3.bf16.msra.mxu0 %v1418_v37 }
 0x1c3   :  { %v1264_v7 = vpop.f32.mrf.mxu0  ;;  %1337 = vmatprep.subr.bf16.mxu0 %v1419_v38 }
 0x1c4   :  { %v406_v9 = vadd.f32 %v1264_v7, %v1100_v42  ;;  %1289 = vmatprep.mubr.bf16.mxu0 %v443_v5  ;;  %v433_v15 = vmax.f32 %v395_v8, 0.0 }
 0x1c5   :  { %v397_v11 = vpop.f32.mrf.mxu0  ;;  %1290 = vmatmul.mubr.bf16.gmra.mxu0 %v444_v6 }
 0x1c6   :  { %v398_v12 = vadd.f32 %v1100_v42, %v397_v11  ;;  %v436_v13 = vmax.f32 %v406_v9, 0.0  ;;  %1338 = vmatpush3.bf16.msra.mxu0 %v1419_v38 }
 0x1c7   :  { %v1267_v14 = vpop.f32.mrf.mxu0  ;;  %1339 = vmatprep.subr.bf16.mxu0 %v1420_v39 }
 0x1c8   :  { %v434_v16 = vmax.f32 %v398_v12, 0.0  ;;  %v446_v20 = vpack.c.bf16 %v436_v13, %v435_v17  ;;  %v419_v24 = vadd.f32 %v1267_v14, %v1100_v42 }
 0x1c9   :  { %v410_v18 = vpop.f32.mrf.mxu0 }
 0x1ca   :  { %v445_v19 = vpack.c.bf16 %v434_v16, %v433_v15  ;;  %v411_v22 = vadd.f32 %v1100_v42, %v410_v18  ;;  %v439_v30 = vmax.f32 %v419_v24, 0.0  ;;  %1340 = vmatpush3.bf16.msra.mxu0 %v1420_v39  ;;  %v1118_v39 = vld [vmem:[%s1744_s8] ss:$0 sm:$0xff] }
 0x1cb   :  { %v1268_v21 = vpop.f32.mrf.mxu0  ;;  %1341 = vmatprep.subr.bf16.mxu0 %v1421_v40 }
 0x1cc   :  { %v422_v23 = vadd.f32 %v1268_v21, %v1100_v42  ;;  %1293 = vmatprep.mubr.bf16.mxu0 %v445_v19  ;;  %v437_v28 = vmax.f32 %v411_v22, 0.0 }
 0x1cd   :  { %v413_v25 = vpop.f32.mrf.mxu0  ;;  %1294 = vmatmul.mubr.bf16.gmra.mxu0 %v446_v20 }
 0x1ce   :  { %v414_v26 = vadd.f32 %v1100_v42, %v413_v25  ;;  %v440_v27 = vmax.f32 %v422_v23, 0.0  ;;  %1342 = vmatpush3.bf16.msra.mxu0 %v1421_v40 }
 0x1cf   :  { %1343 = vmatprep.subr.bf16.mxu0 %v1422_v34 }
 0x1d0   :  { %v438_v29 = vmax.f32 %v414_v26, 0.0  ;;  %v448_v32 = vpack.c.bf16 %v440_v27, %v439_v30 }
 0x1d2   :  { %v447_v31 = vpack.c.bf16 %v438_v29, %v437_v28  ;;  %1344 = vmatpush3.bf16.msra.mxu0 %v1422_v34 }
 0x1d3   :  { %1345 = vmatprep.subr.bf16.mxu0 %v1423_v35 }
 0x1d4   :  { %1297 = vmatprep.mubr.bf16.mxu0 %v447_v31 }
 0x1d5   :  { %1298 = vmatmul.mubr.bf16.gmra.mxu0 %v448_v32 }
 0x1d6   :  { %1346 = vmatpush3.bf16.msra.mxu0 %v1423_v35 }
 0x1d7   :  { %1347 = vmatprep.subr.bf16.mxu0 %v1424_v36 }
 0x1da   :  { %1348 = vmatpush3.bf16.msra.mxu0 %v1424_v36 }
 0x27d   :  { %v1287_v41 = vpop.f32.mrf.mxu0 }
 0x27e   :  { %v563_v47 = vadd.f32 %v1287_v41, %v1109_v43 }
 0x27f   :  { %v554_v42 = vpop.f32.mrf.mxu0 }
 0x280   :  { %v555_v45 = vadd.f32 %v1109_v43, %v554_v42  ;;  %v619_v54 = vmax.f32 %v563_v47, 0.0 }
 0x281   :  { %v1288_v44 = vpop.f32.mrf.mxu0 }
 0x282   :  { %v566_v46 = vadd.f32 %v1288_v44, %v1109_v43  ;;  %v617_v52 = vmax.f32 %v555_v45, 0.0 }
 0x283   :  { %v557_v48 = vpop.f32.mrf.mxu0 }
 0x284   :  { %v558_v49 = vadd.f32 %v1109_v43, %v557_v48  ;;  %v620_v50 = vmax.f32 %v566_v46, 0.0 }
 0x285   :  { %v1291_v51 = vpop.f32.mrf.mxu0 }
 0x286   :  { %v618_v53 = vmax.f32 %v558_v49, 0.0  ;;  %v634_v57 = vpack.c.bf16 %v620_v50, %v619_v54  ;;  %v579_v61 = vadd.f32 %v1291_v51, %v1109_v43 }
 0x287   :  { %v570_v55 = vpop.f32.mrf.mxu0 }
 0x288   :  { %v633_v56 = vpack.c.bf16 %v618_v53, %v617_v52  ;;  %v571_v59 = vadd.f32 %v1109_v43, %v570_v55  ;;  %v623_v4 = vmax.f32 %v579_v61, 0.0 }
 0x289   :  { %v1292_v58 = vpop.f32.mrf.mxu0 }
 0x28a   :  { %v582_v60 = vadd.f32 %v1292_v58, %v1109_v43  ;;  %1317 = vmatprep.mubr.bf16.mxu1 %v633_v56  ;;  %v621_v2 = vmax.f32 %v571_v59, 0.0 }
 0x28b   :  { %v573_v62 = vpop.f32.mrf.mxu0  ;;  %1318 = vmatmul.mubr.bf16.vlgmr.msra.gmra.mxu1 %v634_v57 }
 0x28c   :  { %v574_v63 = vadd.f32 %v1109_v43, %v573_v62  ;;  %v624_v0 = vmax.f32 %v582_v60, 0.0 }
 0x28d   :  { %v1295_v1 = vpop.f32.mrf.mxu0 }
 0x28e   :  { %v622_v3 = vmax.f32 %v574_v63, 0.0  ;;  %v636_v7 = vpack.c.bf16 %v624_v0, %v623_v4  ;;  %v595_v11 = vadd.f32 %v1295_v1, %v1109_v43 }
 0x28f   :  { %v586_v5 = vpop.f32.mrf.mxu0 }
 0x290   :  { %v635_v6 = vpack.c.bf16 %v622_v3, %v621_v2  ;;  %v587_v9 = vadd.f32 %v1109_v43, %v586_v5  ;;  %v627_v18 = vmax.f32 %v595_v11, 0.0 }
 0x291   :  { %v1296_v8 = vpop.f32.mrf.mxu0 }
 0x292   :  { %v598_v10 = vadd.f32 %v1296_v8, %v1109_v43  ;;  %1321 = vmatprep.mubr.bf16.mxu1 %v635_v6  ;;  %v625_v16 = vmax.f32 %v587_v9, 0.0 }
 0x293   :  { %v589_v12 = vpop.f32.mrf.mxu0  ;;  %1322 = vmatmul.mubr.bf16.gmra.mxu1 %v636_v7 }
 0x294   :  { %v590_v13 = vadd.f32 %v1109_v43, %v589_v12  ;;  %v628_v14 = vmax.f32 %v598_v10, 0.0 }
 0x295   :  { %v1299_v15 = vpop.f32.mrf.mxu0 }
 0x296   :  { %v626_v17 = vmax.f32 %v590_v13, 0.0  ;;  %v638_v21 = vpack.c.bf16 %v628_v14, %v627_v18  ;;  %v611_v25 = vadd.f32 %v1299_v15, %v1109_v43 }
 0x297   :  { %v602_v19 = vpop.f32.mrf.mxu0 }
 0x298   :  { %v637_v20 = vpack.c.bf16 %v626_v17, %v625_v16  ;;  %v603_v23 = vadd.f32 %v1109_v43, %v602_v19  ;;  %v631_v31 = vmax.f32 %v611_v25, 0.0 }
 0x299   :  { %v1300_v22 = vpop.f32.mrf.mxu0 }
 0x29a   :  { %v614_v24 = vadd.f32 %v1300_v22, %v1109_v43  ;;  %1325 = vmatprep.mubr.bf16.mxu1 %v637_v20  ;;  %v629_v29 = vmax.f32 %v603_v23, 0.0 }
 0x29b   :  { %v605_v26 = vpop.f32.mrf.mxu0  ;;  %1326 = vmatmul.mubr.bf16.gmra.mxu1 %v638_v21 }
 0x29c   :  { %v606_v27 = vadd.f32 %v1109_v43, %v605_v26  ;;  %v632_v28 = vmax.f32 %v614_v24, 0.0 }
 0x29e   :  { %v630_v30 = vmax.f32 %v606_v27, 0.0  ;;  %v640_v33 = vpack.c.bf16 %v632_v28, %v631_v31 }
 0x2a0   :  { %v639_v32 = vpack.c.bf16 %v630_v30, %v629_v29  ;;  %v1499_v30 = vmov 0.0  }
 0x2a1   :  { %1365 = vmatprep.subr.bf16.mxu1 %v1499_v30 }
 0x2a2   :  { %1329 = vmatprep.mubr.bf16.mxu1 %v639_v32  ;;  %v1127_v32 = vld [vmem:[%s1746_s10] ss:$0 sm:$0xff] }
 0x2a3   :  { %1330 = vmatmul.mubr.bf16.gmra.mxu1 %v640_v33 }
 0x2a4   :  { %1381 = vmatprep.mubr.msk.bf16.mxu1 %vm1500_vm2, %v1499_v30 }
 0x34b   :  { %v1319_v37 = vpop.f32.mrf.mxu1 }
 0x34c   :  { %v755_v43 = vadd.f32 %v1319_v37, %v1118_v39 }
 0x34d   :  { %v746_v38 = vpop.f32.mrf.mxu1 }
 0x34e   :  { %v747_v41 = vadd.f32 %v1118_v39, %v746_v38  ;;  %v811_v50 = vmax.f32 %v755_v43, 0.0 }
 0x34f   :  { %v1320_v40 = vpop.f32.mrf.mxu1 }
 0x350   :  { %v758_v42 = vadd.f32 %v1320_v40, %v1118_v39  ;;  %v809_v48 = vmax.f32 %v747_v41, 0.0 }
 0x351   :  { %v749_v44 = vpop.f32.mrf.mxu1 }
 0x352   :  { %v750_v45 = vadd.f32 %v1118_v39, %v749_v44  ;;  %v812_v46 = vmax.f32 %v758_v42, 0.0 }
 0x353   :  { %v1323_v47 = vpop.f32.mrf.mxu1 }
 0x354   :  { %v810_v49 = vmax.f32 %v750_v45, 0.0  ;;  %v826_v53 = vpack.c.bf16 %v812_v46, %v811_v50  ;;  %v771_v57 = vadd.f32 %v1323_v47, %v1118_v39 }
 0x355   :  { %v762_v51 = vpop.f32.mrf.mxu1 }
 0x356   :  { %v825_v52 = vpack.c.bf16 %v810_v49, %v809_v48  ;;  %v763_v55 = vadd.f32 %v1118_v39, %v762_v51  ;;  %v815_v0 = vmax.f32 %v771_v57, 0.0 }
 0x357   :  { %v1324_v54 = vpop.f32.mrf.mxu1 }
 0x358   :  { %v774_v56 = vadd.f32 %v1324_v54, %v1118_v39  ;;  %1349 = vmatprep.mubr.bf16.mxu0 %v825_v52  ;;  %v813_v62 = vmax.f32 %v763_v55, 0.0 }
 0x359   :  { %v765_v58 = vpop.f32.mrf.mxu1  ;;  %1350 = vmatmul.mubr.bf16.vlgmr.msra.gmra.mxu0 %v826_v53 }
 0x35a   :  { %v766_v59 = vadd.f32 %v1118_v39, %v765_v58  ;;  %v816_v60 = vmax.f32 %v774_v56, 0.0 }
 0x35b   :  { %v1327_v61 = vpop.f32.mrf.mxu1 }
 0x35c   :  { %v814_v63 = vmax.f32 %v766_v59, 0.0  ;;  %v828_v3 = vpack.c.bf16 %v816_v60, %v815_v0  ;;  %v787_v7 = vadd.f32 %v1327_v61, %v1118_v39 }
 0x35d   :  { %v778_v1 = vpop.f32.mrf.mxu1 }
 0x35e   :  { %v827_v2 = vpack.c.bf16 %v814_v63, %v813_v62  ;;  %v779_v5 = vadd.f32 %v1118_v39, %v778_v1  ;;  %v819_v14 = vmax.f32 %v787_v7, 0.0 }
 0x35f   :  { %v1328_v4 = vpop.f32.mrf.mxu1 }
 0x360   :  { %v790_v6 = vadd.f32 %v1328_v4, %v1118_v39  ;;  %1353 = vmatprep.mubr.bf16.mxu0 %v827_v2  ;;  %v817_v12 = vmax.f32 %v779_v5, 0.0 }
 0x361   :  { %v781_v8 = vpop.f32.mrf.mxu1  ;;  %1354 = vmatmul.mubr.bf16.gmra.mxu0 %v828_v3 }
 0x362   :  { %v782_v9 = vadd.f32 %v1118_v39, %v781_v8  ;;  %v820_v10 = vmax.f32 %v790_v6, 0.0 }
 0x363   :  { %v1331_v11 = vpop.f32.mrf.mxu1 }
 0x364   :  { %v818_v13 = vmax.f32 %v782_v9, 0.0  ;;  %v830_v17 = vpack.c.bf16 %v820_v10, %v819_v14  ;;  %v803_v21 = vadd.f32 %v1331_v11, %v1118_v39 }
 0x365   :  { %v794_v15 = vpop.f32.mrf.mxu1 }
 0x366   :  { %v829_v16 = vpack.c.bf16 %v818_v13, %v817_v12  ;;  %v795_v19 = vadd.f32 %v1118_v39, %v794_v15  ;;  %v823_v27 = vmax.f32 %v803_v21, 0.0 }
 0x367   :  { %v1332_v18 = vpop.f32.mrf.mxu1 }
 0x368   :  { %v806_v20 = vadd.f32 %v1332_v18, %v1118_v39  ;;  %1357 = vmatprep.mubr.bf16.mxu0 %v829_v16  ;;  %v821_v25 = vmax.f32 %v795_v19, 0.0 }
 0x369   :  { %v797_v22 = vpop.f32.mrf.mxu1  ;;  %1358 = vmatmul.mubr.bf16.gmra.mxu0 %v830_v17 }
 0x36a   :  { %v798_v23 = vadd.f32 %v1118_v39, %v797_v22  ;;  %v824_v24 = vmax.f32 %v806_v20, 0.0 }
 0x36c   :  { %v822_v26 = vmax.f32 %v798_v23, 0.0  ;;  %v832_v29 = vpack.c.bf16 %v824_v24, %v823_v27  ;;  %v1017_v24 = vld [vmem:[%s1747_s11] sm:$0x1]  ;;  %s1469_s11 = scalar_lea.vmem %s1082_s29, 16 }
 0x36d   :  { %p1470_p10 = scmp.ne.s32.totalorder %s1082_s29, %s1469_s11  ;;  %p1475_p12 = scmp.lt.s32.totalorder %s1473_s2, %s1469_s11 }
 0x36e   :  { %v831_v28 = vpack.c.bf16 %v822_v26, %v821_v25  ;;  %v1027_v25 = vstv %s1748_s12 }
 0x36f   :  { %p1476_p13 = por %p1475_p12, %p1474_p11 }
 0x370   :  { %1361 = vmatprep.mubr.bf16.mxu0 %v831_v28 }
 0x371   :  { %1362 = vmatmul.mubr.bf16.gmra.mxu0 %v832_v29  ;;  %p1477_p0 = pnand %p1476_p13, %p1470_p10 }
 0x419   :  { %v1351_v31 = vpop.f32.mrf.mxu0 }
 0x41a   :  { %v947_v34 = vadd.f32 %v1351_v31, %v1127_v32 }
 0x41b   :  { %v938_v33 = vpop.f32.mrf.mxu0 }
 0x41c   :  { %v939_v36 = vadd.f32 %v1127_v32, %v938_v33  ;;  %v1003_v39 = vmax.f32 %v947_v34, 0.0 }
 0x41d   :  { %v1352_v35 = vpop.f32.mrf.mxu0 }
 0x41e   :  { %v950_v37 = vadd.f32 %v1352_v35, %v1127_v32  ;;  %v1001_v43 = vmax.f32 %v939_v36, 0.0 }
 0x41f   :  { %v941_v38 = vpop.f32.mrf.mxu0 }
 0x420   :  { %v1004_v40 = vmax.f32 %v950_v37, 0.0  ;;  %v942_v41 = vadd.f32 %v1127_v32, %v941_v38 }
 0x421   :  { %v1355_v42 = vpop.f32.mrf.mxu0 }
 0x422   :  { %v1019_v44 = vpack.c.bf16 %v1004_v40, %v1003_v39  ;;  %v1002_v45 = vmax.f32 %v942_v41, 0.0  ;;  %v963_v15 = vadd.f32 %v1355_v42, %v1127_v32 }
 0x423   :  { %v954_v46 = vpop.f32.mrf.mxu0 }
 0x424   :  { %v1018_v47 = vpack.c.bf16 %v1002_v45, %v1001_v43  ;;  %v1007_v17 = vmax.f32 %v963_v15, 0.0  ;;  %v955_v20 = vadd.f32 %v1127_v32, %v954_v46 }
 0x425   :  { %v1356_v48 = vpop.f32.mrf.mxu0 }
 0x426   :  { %v966_v13 = vadd.f32 %v1356_v48, %v1127_v32  ;;  %v1005_v22 = vmax.f32 %v955_v20, 0.0 }
 0x427   :  { %v957_v49 = vpop.f32.mrf.mxu0 }
 0x428   :  { %v1008_v16 = vmax.f32 %v966_v13, 0.0  ;;  %v958_v19 = vadd.f32 %v1127_v32, %v957_v49 }
 0x429   :  { %v1359_v50 = vpop.f32.mrf.mxu0 }
 0x42a   :  { %v979_v5 = vadd.f32 %v1359_v50, %v1127_v32  ;;  %v1021_v18 = vpack.c.bf16 %v1008_v16, %v1007_v17  ;;  %v1006_v21 = vmax.f32 %v958_v19, 0.0 }
 0x42b   :  { %v970_v51 = vpop.f32.mrf.mxu0 }
 0x42c   :  { %v1011_v7 = vmax.f32 %v979_v5, 0.0  ;;  %v971_v10 = vadd.f32 %v1127_v32, %v970_v51  ;;  %v1020_v23 = vpack.c.bf16 %v1006_v21, %v1005_v22 }
 0x42d   :  { %v1360_v52 = vpop.f32.mrf.mxu0 }
 0x42e   :  { %v982_v3 = vadd.f32 %v1360_v52, %v1127_v32  ;;  %v1009_v12 = vmax.f32 %v971_v10, 0.0 }
 0x42f   :  { %v973_v53 = vpop.f32.mrf.mxu0 }
 0x430   :  { %v1012_v6 = vmax.f32 %v982_v3, 0.0  ;;  %v974_v9 = vadd.f32 %v1127_v32, %v973_v53 }
 0x431   :  { %v1363_v54 = vpop.f32.mrf.mxu0 }
 0x432   :  { %v995_v56 = vadd.f32 %v1363_v54, %v1127_v32  ;;  %v1023_v8 = vpack.c.bf16 %v1012_v6, %v1011_v7  ;;  %v1010_v11 = vmax.f32 %v974_v9, 0.0 }
 0x433   :  { %v986_v55 = vpop.f32.mrf.mxu0 }
 0x434   :  { %v1015_v60 = vmax.f32 %v995_v56, 0.0  ;;  %v987_v0 = vadd.f32 %v1127_v32, %v986_v55  ;;  %v1022_v14 = vpack.c.bf16 %v1010_v11, %v1009_v12 }
 0x435   :  { %v1364_v57 = vpop.f32.mrf.mxu0 }
 0x436   :  { %v998_v58 = vadd.f32 %v1364_v57, %v1127_v32  ;;  %v1013_v2 = vmax.f32 %v987_v0, 0.0 }
 0x437   :  { %v989_v59 = vpop.f32.mrf.mxu0 }
 0x438   :  { %v1016_v61 = vmax.f32 %v998_v58, 0.0  ;;  %v990_v63 = vadd.f32 %v1127_v32, %v989_v59 }
 0x43a   :  { %v1025_v62 = vpack.c.bf16 %v1016_v61, %v1015_v60  ;;  %v1014_v1 = vmax.f32 %v990_v63, 0.0 }
 0x43c   :  { %1366 = vmatpush3.bf16.xpose.msra.mxu1 %v1025_v62  ;;  %v1024_v4 = vpack.c.bf16 %v1014_v1, %v1013_v2 }
 0x43d   :  { %1367 = vmatprep.subr.bf16.mxu1 %v1499_v30 }
 0x444   :  { %1368 = vmatpush3.bf16.xpose.msra.mxu1 %v1024_v4 }
 0x445   :  { %1369 = vmatprep.subr.bf16.mxu1 %v1499_v30 }
 0x44c   :  { %1370 = vmatpush3.bf16.xpose.msra.mxu1 %v1023_v8 }
 0x44d   :  { %1371 = vmatprep.subr.bf16.mxu1 %v1499_v30 }
 0x454   :  { %1372 = vmatpush3.bf16.xpose.msra.mxu1 %v1022_v14 }
 0x455   :  { %1373 = vmatprep.subr.bf16.mxu1 %v1499_v30 }
 0x45c   :  { %1374 = vmatpush3.bf16.xpose.msra.mxu1 %v1021_v18 }
 0x45d   :  { %1375 = vmatprep.subr.bf16.mxu1 %v1499_v30 }
 0x464   :  { %1376 = vmatpush3.bf16.xpose.msra.mxu1 %v1020_v23 }
 0x465   :  { %1377 = vmatprep.subr.bf16.mxu1 %v1499_v30 }
 0x46c   :  { %1378 = vmatpush3.bf16.xpose.msra.mxu1 %v1019_v44 }
 0x46d   :  { %1379 = vmatprep.subr.bf16.mxu1 %v1499_v30 }
 0x474   :  { %1380 = vmatpush3.bf16.xpose.msra.mxu1 %v1018_v47 }
 0x47b   :  { %1382 = vmatmul.mubr.bf16.vlgmr.msra.gmra.mxu1 %v1017_v24 }
 0x53b   :  { %v1062_v26 = vpop.f32.mrf.mxu1 }
 0x53c   :  { %v1063_v27 = vadd.f32 %v1062_v26, %v1027_v25 }
 0x53d   :  { %v1383_v28 = vpop.f32.mrf.mxu1 }
 0x53e   :  { %v1136_v29 = vmul.f32 -1.442695, %v1063_v27 }
 0x53f   :  { %v1065_v31 = vpop.f32.mrf.mxu1 }
 0x540   :  { %1425 = vpow2.f32 %v1136_v29 }
 0x541   :  { %v1384_v32 = vpop.f32.mrf.mxu1 }
 0x54d   :  { %v1426_v33 = vpop.eup %1425 }
 0x54e   :  { %v1071_v34 = vadd.f32 1.0, %v1426_v33 }
 0x550   :  { %1427 = vrcp.f32 %v1071_v34 }
 0x55d   :  { %v1428_v30 = vpop.eup %1427 }
 0x55e   :  { %1074 = vst [vmem:[#allocation8] sm:$0x1] %v1428_v30 }
 0x55f   :  { %1480 = shalt.err (!%p1477_p0)
}
 0x560   :  { %1084 = dma.vmem_to_hbm [thread:$0]  %s1082_s29, 16, %s1749_s13, [#allocation5]  }
 0x561   :  { %1493 = dma.done.wait [#allocation5], 16  }
 0x562   :  { %1494 = vsyncadd [#allocation5], 4294967280 }
 0x563   :  { %1088 = vsyncpa [#allocation4], 1 }
 0x564   :  { %1089 = vsyncpa [#allocation7], 1 }
 0x565   :  { %1090 = vsyncpa [#allocation5], 1 }

</bundles_post_ra>
